<compile_context>
chip_gen: v7x
topology: tpu7x:2x2x1
jax: 0.10.0
libtpu: 0.0.40
codegen_flags: <defaults>
</compile_context>

<pallas_src>
import functools

import jax
import jax.numpy as jnp
from jax.experimental import pallas as pl
from jax.experimental.pallas import tpu as pltpu


def _round_up(a: int, b: int) -> int:
    return (a + b - 1) // b * b


# ----------------------------- kernel -------------------------------------- #

def conv_block_kernel(p_ref, w_ref, b_ref, o_ref, *, precision):
    """Fused im2col-matmul + bias + ReLU on one (TM, Cout_pad) output tile.

    p_ref: (TM, Kc_pad)        lane-dense im2col patch tile (compute dtype)
    w_ref: (Kc_pad, Cout_pad)  zero-padded conv weight, resident across the grid
    b_ref: (1, Cout_pad)       zero-padded conv bias (f32), resident
    o_ref: (TM, Cout_pad)      lane-dense output tile (f32)
    """
    acc = jnp.dot(p_ref[...], w_ref[...],
                  preferred_element_type=jnp.float32,
                  precision=precision)
    acc = acc + b_ref[...]                                    # broadcast (1, Cout_pad)
    o_ref[...] = jnp.maximum(acc, 0.0).astype(o_ref.dtype)    # single dense store


# ----------------------------- wrapper ------------------------------------- #

@functools.partial(jax.jit, static_argnames=("dilation", "compute_dtype"))
def conv_block_forward(x, w, b, dilation=1, compute_dtype=jnp.float32):
    """ConvBlock forward (default config): Conv1d(padding='same') + bias + ReLU.

    x: (B, Cin, L)    PyTorch NCL input
    w: (Cout, Cin, K) PyTorch Conv1d weight
    b: (Cout,)        PyTorch Conv1d bias
    compute_dtype: jnp.float32 (exact) or jnp.bfloat16 (v6e/v7x MXU fast path,
                   f32 accumulation + f32 epilogue either way).
    returns (B, Cout, L)
    """
    B, Cin, L = x.shape
    Cout, _, K = w.shape
    total_pad = dilation * (K - 1)
    pad_lo = total_pad // 2
    pad_hi = total_pad - pad_lo

    # ---- layout plumbing outside the kernel (plain XLA ops) ----------------
    x_cl = jnp.transpose(x, (0, 2, 1))                           # (B, L, Cin)
    x_pad = jnp.pad(x_cl, ((0, 0), (pad_lo, pad_hi), (0, 0)))    # (B, Lp, Cin)

    # im2col slab built in the wrapper (no in-kernel lane-axis concatenation);
    # one batched slice per tap — no per-batch Python loop.
    taps = [x_pad[:, k * dilation:k * dilation + L, :] for k in range(K)]
    patches = jnp.concatenate(taps, axis=-1).reshape(B * L, K * Cin)

    w_mat = jnp.transpose(w, (2, 1, 0)).reshape(K * Cin, Cout)   # row = k*Cin + c

    # ---- lane/sublane-dense padding (MXU-native widths, unmasked stores) ---
    M = B * L
    Kc = K * Cin
    Kc_pad = _round_up(Kc, 128)        # contraction dim -> full MXU column
    Cout_pad = _round_up(Cout, 128)    # output lanes    -> unmasked vst
    TM = 512 if M >= 512 else _round_up(M, 8)
    M_pad = _round_up(M, TM)

    patches = jnp.pad(patches, ((0, M_pad - M), (0, Kc_pad - Kc))).astype(compute_dtype)
    w_mat = jnp.pad(w_mat, ((0, Kc_pad - Kc), (0, Cout_pad - Cout))).astype(compute_dtype)
    b_row = jnp.pad(b.reshape(1, Cout), ((0, 0), (0, Cout_pad - Cout))).astype(jnp.float32)

    # f32 inputs: true-f32 MXU contraction (matches the HIGHEST-precision ref);
    # bf16 inputs: native bf16 MXU with f32 accumulation (precision arg unused).
    precision = (jax.lax.Precision.HIGHEST
                 if jnp.dtype(compute_dtype) == jnp.dtype(jnp.float32) else None)

    grid = (M_pad // TM,)
    kernel = functools.partial(conv_block_kernel, precision=precision)

    itemsize = jnp.dtype(compute_dtype).itemsize
    vmem_need = (2 * TM * Kc_pad * itemsize          # double-buffered patch tiles
                 + 2 * TM * Cout_pad * 4             # double-buffered output tiles
                 + 2 * Kc_pad * Cout_pad * itemsize  # resident weight buffers
                 + 2 * Cout_pad * 4)                 # resident bias
    vmem_limit = int(min(max(3 * vmem_need, 8 * 1024 * 1024), 48 * 1024 * 1024))

    flops = 2 * M_pad * Kc_pad * Cout_pad + 2 * M_pad * Cout_pad
    bytes_accessed = ((M_pad * Kc_pad + Kc_pad * Cout_pad) * itemsize
                      + Cout_pad * 4 + M_pad * Cout_pad * 4)

    out2d = pl.pallas_call(
        kernel,
        out_shape=jax.ShapeDtypeStruct((M_pad, Cout_pad), jnp.float32),
        grid=grid,
        in_specs=[
            pl.BlockSpec((TM, Kc_pad), lambda i: (i, 0)),        # patch tile
            pl.BlockSpec((Kc_pad, Cout_pad), lambda i: (0, 0)),  # weights (resident)
            pl.BlockSpec((1, Cout_pad), lambda i: (0, 0)),       # bias (resident)
        ],
        out_specs=pl.BlockSpec((TM, Cout_pad), lambda i: (i, 0)),
        compiler_params=pltpu.CompilerParams(
            dimension_semantics=("parallel",),
            vmem_limit_bytes=vmem_limit),
        cost_estimate=pl.CostEstimate(flops=flops, transcendentals=0,
                                      bytes_accessed=bytes_accessed),
    )(patches, w_mat, b_row)

    out = out2d[:M, :Cout].reshape(B, L, Cout)                   # drop padding rows/lanes
    return jnp.transpose(out, (0, 2, 1)).astype(x.dtype)         # back to PyTorch NCL


# ----------------------------- reference ----------------------------------- #

def reference_forward(x, w, b, dilation=1):
    """Pure-JAX reference of Conv1d(padding='same') + bias + ReLU (NCL layout)."""
    B, Cin, L = x.shape
    Cout, _, K = w.shape
    total_pad = dilation * (K - 1)
    pad_lo = total_pad // 2
    pad_hi = total_pad - pad_lo
    x_pad = jnp.pad(x, ((0, 0), (0, 0), (pad_lo, pad_hi)))                # (B, Cin, Lp)
    taps = jnp.stack([x_pad[:, :, k * dilation:k * dilation + L]
                      for k in range(K)], axis=1)                          # (B, K, Cin, L)
    out = jnp.einsum('bkcl,ock->bol', taps, w,
                     precision=jax.lax.Precision.HIGHEST)
    out = out + b[None, :, None]
    return jnp.maximum(out, 0.0)


# ----------------------------- main ----------------------------------------- #

if __name__ == "__main__":
    # Small shapes consistent with ConvBlock defaults (padding='same', dilation=1,
    # activation='relu', no norm / dropout).
    B = 2       # batch
    Cin = 4     # in_channels
    L = 16      # sequence length
    Cout = 16   # out_channels
    K = 5       # kernel_size (odd -> symmetric 'same' padding)

    key = jax.random.PRNGKey(0)
    kx, kw, kb = jax.random.split(key, 3)

    x = jax.random.normal(kx, (B, Cin, L), dtype=jnp.float32)
    w = 0.1 * jax.random.normal(kw, (Cout, Cin, K), dtype=jnp.float32)   # PyTorch layout
    b = 0.1 * jax.random.normal(kb, (Cout,), dtype=jnp.float32)

    ref = reference_forward(x, w, b)

    # f32 path (exact, Precision.HIGHEST MXU contraction).
    out = jax.block_until_ready(conv_block_forward(x, w, b))
    assert out.shape == (B, Cout, L), out.shape
    assert jnp.allclose(out, ref, atol=2e-5, rtol=2e-5), "f32 mismatch vs reference"

    # bf16 MXU fast path (v6e/v7x), f32 accumulation + f32 epilogue.
    out_bf16 = jax.block_until_ready(
        conv_block_forward(x, w, b, compute_dtype=jnp.bfloat16))
    assert out_bf16.shape == (B, Cout, L), out_bf16.shape
    assert jnp.allclose(out_bf16, ref, atol=5e-2, rtol=5e-2), "bf16 mismatch vs reference"

    print("KERNEL_OK")
</pallas_src>

<mosaic_0001>
module attributes {stable_mosaic.version = 11 : i64} {
  func.func @conv_block_kernel(%arg0: i32, %arg1: memref<32x128xf32, #tpu.memory_space<vmem>>, %arg2: memref<128x128xf32, #tpu.memory_space<vmem>>, %arg3: memref<1x128xf32, #tpu.memory_space<vmem>>, %arg4: memref<32x128xf32, #tpu.memory_space<vmem>>) attributes {dimension_semantics = [#tpu.dimension_semantics<parallel>], iteration_bounds = array<i64: 1>, scalar_prefetch = 0 : i64, scratch_operands = 0 : i64, tpu.core_type = #tpu.core_type<tc>, window_params = [{transform_indices = @transform_0, window_bounds = array<i64: 32, 128>}, {pipeline_mode = #tpu.pipeline_mode<synchronous>, transform_indices = @transform_1, window_bounds = array<i64: 128, 128>}, {pipeline_mode = #tpu.pipeline_mode<synchronous>, transform_indices = @transform_2, window_bounds = array<i64: 1, 128>}, {transform_indices = @transform_3, window_bounds = array<i64: 32, 128>}]} {
    %c0 = arith.constant 0 : index
    %c0_0 = arith.constant 0 : index
    %0 = vector.load %arg1[%c0, %c0_0] : memref<32x128xf32, #tpu.memory_space<vmem>>, vector<32x128xf32>
    %c0_1 = arith.constant 0 : index
    %c0_2 = arith.constant 0 : index
    %1 = vector.load %arg2[%c0_1, %c0_2] : memref<128x128xf32, #tpu.memory_space<vmem>>, vector<128x128xf32>
    %cst = arith.constant dense<0.000000e+00> : vector<32x128xf32>
    %2 = tpu.matmul %0, %1, %cst {dimension_numbers = #tpu.dot_dimension_numbers<[1], [0], [0], [1], [0, 0, 1, 1], [], []>, precision = #tpu.contract_precision<fp32>} : vector<32x128xf32>, vector<128x128xf32>, vector<32x128xf32> -> vector<32x128xf32>
    %c0_3 = arith.constant 0 : index
    %c0_4 = arith.constant 0 : index
    %3 = vector.load %arg3[%c0_3, %c0_4] : memref<1x128xf32, #tpu.memory_space<vmem>>, vector<1x128xf32>
    %4 = vector.broadcast %3 : vector<1x128xf32> to vector<32x128xf32>
    %5 = arith.addf %2, %4 : vector<32x128xf32>
    %cst_5 = arith.constant 0.000000e+00 : f32
    %6 = vector.broadcast %cst_5 : f32 to vector<32x128xf32>
    %7 = arith.maximumf %5, %6 : vector<32x128xf32>
    %c0_6 = arith.constant 0 : index
    %c0_7 = arith.constant 0 : index
    %8 = vector.load %arg4[%c0_6, %c0_7] : memref<32x128xf32, #tpu.memory_space<vmem>>, vector<32x128xf32>
    tpu.vector_store %arg4[%c0_6, %c0_7], %7 {strides = array<i32>} : memref<32x128xf32, #tpu.memory_space<vmem>>, vector<32x128xf32>,
    return
  }
  func.func @transform_0(%arg0: i32) -> (i32, i32) {
    %c0_i32 = arith.constant 0 : i32
    %c0_i32_0 = arith.constant 0 : i32
    return %arg0, %c0_i32 : i32, i32
  }
  func.func @transform_1(%arg0: i32) -> (i32, i32) {
    %c0_i32 = arith.constant 0 : i32
    %c0_i32_0 = arith.constant 0 : i32
    %c0_i32_1 = arith.constant 0 : i32
    return %c0_i32, %c0_i32_0 : i32, i32
  }
  func.func @transform_2(%arg0: i32) -> (i32, i32) {
    %c0_i32 = arith.constant 0 : i32
    %c0_i32_0 = arith.constant 0 : i32
    %c0_i32_1 = arith.constant 0 : i32
    return %c0_i32, %c0_i32_0 : i32, i32
  }
  func.func @transform_3(%arg0: i32) -> (i32, i32) {
    %c0_i32 = arith.constant 0 : i32
    %c0_i32_0 = arith.constant 0 : i32
    return %arg0, %c0_i32 : i32, i32
  }
}

</mosaic_0001>

<bundles_post_ra>
// kernel: conv_block_forward.1
= control target key start
LH: loop header
LB: loop body
LE: loop exit
PB: predicated region body
PF: predicated region fallthrough
CT: control target
= control target key end

     0   :  { %s1767_s1 = inlined_call_operand.vmem [shape: f32[128,128], index: 1, kind: input, shape index: {}]   ;;  %s1768_s0 = inlined_call_operand.vmem [shape: f32[32,128], index: 0, kind: input, shape index: {}]   ;;  %s1769_s2 = inlined_call_operand.vmem [shape: f32[1,128], index: 2, kind: input, shape index: {}]   ;;  %s1770_s3 = inlined_call_operand.vmem [shape: f32[32,128], index: 3, kind: output, shape index: {}]  }
   0x1   :  { %v18_v0 = vld [vmem:[%s1767_s1] sm:$0xff]  ;;  %v19_v1 = vld [vmem:[%s1767_s1 + $0x8] sm:$0xff]  ;;  %v20_v2 = vld [vmem:[%s1767_s1 + $0x10] sm:$0xff] }
   0x2   :  { %v42_v3 = vand.u32 4294901760, %v18_v0  ;;  %v45_v4 = vand.u32 4294901760, %v19_v1  ;;  %v21_v5 = vld [vmem:[%s1767_s1 + $0x18] sm:$0xff]  ;;  %v48_v6 = vand.u32 4294901760, %v20_v2  ;;  %v1423_v7 = vld [vmem:[%s1767_s1 + $0x20] sm:$0xff]  ;;  %v1428_v8 = vld [vmem:[%s1767_s1 + $0x28] sm:$0xff] }
   0x3   :  { %v51_v9 = vand.u32 4294901760, %v21_v5  ;;  %v54_v11 = vand.u32 4294901760, %v1423_v7  ;;  %v57_v12 = vand.u32 4294901760, %v1428_v8  ;;  %v1439_v14 = vld [vmem:[%s1767_s1 + $0x30] sm:$0xff]  ;;  %v1444_v15 = vld [vmem:[%s1767_s1 + $0x38] sm:$0xff]  ;;  %v14_v16 = vld [vmem:[%s1768_s0] sm:$0xff] }
   0x4   :  { %v1430_v10 = vpack.c.bf16 %v45_v4, %v42_v3  ;;  %v1453_v17 = vand.u32 4294901760, %v14_v16  ;;  %v60_v19 = vand.u32 4294901760, %v1439_v14  ;;  %v63_v20 = vand.u32 4294901760, %v1444_v15  ;;  %v1468_v21 = vld [vmem:[%s1767_s1 + $0x40] sm:$0xff]  ;;  %v1473_v22 = vld [vmem:[%s1767_s1 + $0x48] sm:$0xff]  ;;  %v1494_v28 = vld [vmem:[%s1767_s1 + $0x50] sm:$0xff] }
   0x5   :  { %v1434_v13 = vpack.c.bf16 %v51_v9, %v48_v6  ;;  %v1461_v18 = vpack.c.bf16 %v57_v12, %v54_v11  ;;  %v66_v26 = vand.u32 4294901760, %v1468_v21  ;;  %v69_v27 = vand.u32 4294901760, %v1473_v22  ;;  %v1499_v29 = vld [vmem:[%s1767_s1 + $0x58] sm:$0xff]  ;;  %v15_v33 = vld [vmem:[%s1768_s0 + $0x8] sm:$0xff]  ;;  %v1520_v36 = vld [vmem:[%s1767_s1 + $0x60] sm:$0xff] }
   0x6   :  { %1173 = vmatprep.subr.bf16.mxu1 %v1430_v10  ;;  %1269 = vmatprep.subr.bf16.mxu0 %v1430_v10  ;;  %v1476_v23 = vsub.f32 %v14_v16, %v1453_v17  ;;  %v1487_v25 = vpack.c.bf16 %v63_v20, %v60_v19  ;;  %v72_v31 = vand.u32 4294901760, %v1494_v28  ;;  %v75_v35 = vand.u32 4294901760, %v1499_v29  ;;  %v1525_v37 = vld [vmem:[%s1767_s1 + $0x68] sm:$0xff]  ;;  %v1534_v40 = vld [vmem:[%s1767_s1 + $0x70] sm:$0xff]  ;;  %v1549_v46 = vld [vmem:[%s1767_s1 + $0x78] sm:$0xff] }
   0x7   :  { %1175 = vmatpush3.bf16.msra.mxu1 %v1430_v10  ;;  %1271 = vmatpush3.bf16.msra.mxu0 %v1430_v10  ;;  %v1514_v34 = vpack.c.bf16 %v69_v27, %v66_v26  ;;  %v1527_v38 = vsub.f32 %v18_v0, %v42_v3  ;;  %v1529_v39 = vsub.f32 %v19_v1, %v45_v4  ;;  %v1536_v41 = vand.u32 4294901760, %v15_v33  ;;  %v16_v55 = vld [vmem:[%s1768_s0 + $0x10] sm:$0xff]  ;;  %v17_v62 = vld [vmem:[%s1768_s0 + $0x18] sm:$0xff] }
   0x8   :  { %1177 = vmatprep.subr.bf16.mxu1 %v1434_v13  ;;  %1273 = vmatprep.subr.bf16.mxu0 %v1434_v13  ;;  %v124_v24 = vand.u32 4294901760, %v1476_v23  ;;  %v1538_v42 = vsub.f32 %v20_v2, %v48_v6  ;;  %v1540_v43 = vsub.f32 %v21_v5, %v51_v9  ;;  %v78_v44 = vand.u32 4294901760, %v1520_v36 }
   0x9   :  { %v81_v45 = vand.u32 4294901760, %v1525_v37  ;;  %v1557_v47 = vpack.c.bf16 %v75_v35, %v72_v31  ;;  %v165_v48 = vand.u32 4294901760, %v1527_v38  ;;  %v172_v49 = vand.u32 4294901760, %v1529_v39 }
   0xa   :  { %v125_v30 = vsub.f32 %v1476_v23, %v124_v24  ;;  %1090 = vmatprep.mubr.f32.mxu0 %v124_v24  ;;  %v1772_v50 = vand.u32 4294901760, %v1534_v40  ;;  %v1771_v51 = vand.u32 4294901760, %v1549_v46  ;;  %v1564_v52 = vsub.f32 %v15_v33, %v1536_v41 }
   0xb   :  { %1179 = vmatpush3.bf16.msra.mxu1 %v1434_v13  ;;  %1275 = vmatpush3.bf16.msra.mxu0 %v1434_v13  ;;  %v179_v53 = vand.u32 4294901760, %v1538_v42  ;;  %v186_v54 = vand.u32 4294901760, %v1540_v43  ;;  %v1577_v56 = vpack.c.bf16 %v81_v45, %v78_v44  ;;  %v1582_v57 = vsub.f32 %v1423_v7, %v54_v11 }
   0xc   :  { %1181 = vmatprep.subr.bf16.mxu1 %v1461_v18  ;;  %1277 = vmatprep.subr.bf16.mxu0 %v1461_v18  ;;  %v126_v32 = vand.u32 4294901760, %v125_v30  ;;  %v166_v58 = vsub.f32 %v1527_v38, %v165_v48  ;;  %v173_v59 = vsub.f32 %v1529_v39, %v172_v49  ;;  %v1591_v60 = vsub.f32 %v1428_v8, %v57_v12 }
   0xd   :  { %v1593_v61 = vand.u32 4294901760, %v16_v55  ;;  %v1602_v63 = vpack.c.bf16 %v1771_v51, %v1772_v50  ;;  %v134_v0 = vand.u32 4294901760, %v1564_v52  ;;  %v180_v1 = vsub.f32 %v1538_v42, %v179_v53 }
   0xe   :  { %976 = vmatprep.mubr.f32.mxu1 %v126_v32  ;;  %v187_v2 = vsub.f32 %v1540_v43, %v186_v54  ;;  %v193_v3 = vand.u32 4294901760, %v1582_v57  ;;  %v1613_v4 = vsub.f32 %v1439_v14, %v60_v19  ;;  %v1618_v5 = vsub.f32 %v1444_v15, %v63_v20 }
   0xf   :  { %1183 = vmatpush3.bf16.msra.mxu1 %v1461_v18  ;;  %1279 = vmatpush3.bf16.msra.mxu0 %v1461_v18  ;;  %v1621_v6 = vsub.f32 %v16_v55, %v1593_v61  ;;  %v167_v7 = vand.u32 4294901760, %v166_v58  ;;  %v174_v8 = vand.u32 4294901760, %v173_v59  ;;  %v200_v9 = vand.u32 4294901760, %v1591_v60 }
  0x10   :  { %1185 = vmatprep.subr.bf16.mxu1 %v1487_v25  ;;  %1281 = vmatprep.subr.bf16.mxu0 %v1487_v25  ;;  %v1626_v11 = vand.u32 4294901760, %v17_v62  ;;  %v1300_v12 = vpack.c.bf16 %v172_v49, %v165_v48  ;;  %v135_v16 = vsub.f32 %v1564_v52, %v134_v0  ;;  %v181_v15 = vand.u32 4294901760, %v180_v1 }
  0x11   :  { %v144_v14 = vand.u32 4294901760, %v1621_v6  ;;  %v1633_v19 = vsub.f32 %v1468_v21, %v66_v26  ;;  %v188_v24 = vand.u32 4294901760, %v187_v2  ;;  %v194_v30 = vsub.f32 %v1582_v57, %v193_v3 }
  0x12   :  { %v1636_v20 = vsub.f32 %v17_v62, %v1626_v11  ;;  %v207_v32 = vand.u32 4294901760, %v1613_v4  ;;  %v214_v33 = vand.u32 4294901760, %v1618_v5  ;;  %v1204_v21 = vpack.c.bf16 %v174_v8, %v167_v7 }
  0x13   :  { %1187 = vmatpush3.bf16.msra.mxu1 %v1487_v25  ;;  %1283 = vmatpush3.bf16.msra.mxu0 %v1487_v25  ;;  %v201_v26 = vsub.f32 %v1591_v60, %v200_v9  ;;  %v1649_v48 = vsub.f32 %v1473_v22, %v69_v27  ;;  %v1304_v55 = vpack.c.bf16 %v186_v54, %v179_v53  ;;  %v136_v59 = vand.u32 4294901760, %v135_v16 }
  0x14   :  { %1189 = vmatprep.subr.bf16.mxu1 %v1514_v34  ;;  %1285 = vmatprep.subr.bf16.mxu0 %v1514_v34  ;;  %v154_v49 = vand.u32 4294901760, %v1636_v20  ;;  %v145_v58 = vsub.f32 %v1621_v6, %v144_v14  ;;  %v221_v62 = vand.u32 4294901760, %v1633_v19  ;;  %v1657_v1 = vsub.f32 %v1494_v28, %v72_v31 }
  0x15   :  { %v208_v22 = vsub.f32 %v1613_v4, %v207_v32  ;;  %v215_v27 = vsub.f32 %v1618_v5, %v214_v33  ;;  %v1667_v53 = vsub.f32 %v1499_v29, %v75_v35  ;;  %v1208_v54 = vpack.c.bf16 %v188_v24, %v181_v15 }
  0x16   :  { %v155_v2 = vsub.f32 %v1636_v20, %v154_v49  ;;  %v195_v28 = vand.u32 4294901760, %v194_v30  ;;  %v202_v31 = vand.u32 4294901760, %v201_v26  ;;  %v228_v7 = vand.u32 4294901760, %v1649_v48 }
  0x17   :  { %1191 = vmatpush3.bf16.msra.mxu1 %v1514_v34  ;;  %1287 = vmatpush3.bf16.msra.mxu0 %v1514_v34  ;;  %v146_v8 = vand.u32 4294901760, %v145_v58  ;;  %v1308_v16 = vpack.c.bf16 %v200_v9, %v193_v3  ;;  %v222_v51 = vsub.f32 %v1633_v19, %v221_v62  ;;  %v1674_v50 = vsub.f32 %v1520_v36, %v78_v44 }
  0x18   :  { %1193 = vmatprep.subr.bf16.mxu1 %v1557_v47  ;;  %1289 = vmatprep.subr.bf16.mxu0 %v1557_v47  ;;  %v156_v29 = vand.u32 4294901760, %v155_v2  ;;  %v209_v35 = vand.u32 4294901760, %v208_v22  ;;  %v216_v15 = vand.u32 4294901760, %v215_v27  ;;  %v235_v24 = vand.u32 4294901760, %v1657_v1 }
  0x19   :  { %v242_v30 = vand.u32 4294901760, %v1667_v53  ;;  %v229_v3 = vsub.f32 %v1649_v48, %v228_v7  ;;  %v1682_v9 = vsub.f32 %v1525_v37, %v81_v45  ;;  %v1312_v36 = vpack.c.bf16 %v214_v33, %v207_v32 }
  0x1a   :  { %v223_v44 = vand.u32 4294901760, %v222_v51  ;;  %v249_v58 = vand.u32 4294901760, %v1674_v50  ;;  %v1773_v45 = vand.u32 4294901760, %v1534_v40  ;;  %v1316_v33 = vpack.c.bf16 %v228_v7, %v221_v62 }
  0x1b   :  { %1195 = vmatpush3.bf16.msra.mxu1 %v1557_v47  ;;  %1291 = vmatpush3.bf16.msra.mxu0 %v1557_v47  ;;  %v243_v26 = vsub.f32 %v1667_v53, %v242_v30  ;;  %v256_v37 = vand.u32 4294901760, %v1682_v9 }
  0x1c   :  { %1197 = vmatprep.subr.bf16.mxu1 %v1577_v56  ;;  %1293 = vmatprep.subr.bf16.mxu0 %v1577_v56  ;;  %v1691_v51 = vsub.f32 %v1534_v40, %v1773_v45  ;;  %v250_v2 = vsub.f32 %v1674_v50, %v249_v58 }
  0x1d   :  { %v257_v22 = vsub.f32 %v1682_v9, %v256_v37 }
  0x1e   :  { %v263_v27 = vand.u32 4294901760, %v1691_v51  ;;  %v251_v62 = vand.u32 4294901760, %v250_v2 }
  0x1f   :  { %1199 = vmatpush3.bf16.msra.mxu1 %v1577_v56  ;;  %1295 = vmatpush3.bf16.msra.mxu0 %v1577_v56 }
  0x20   :  { %1201 = vmatprep.subr.bf16.mxu1 %v1602_v63  ;;  %1297 = vmatprep.subr.bf16.mxu0 %v1602_v63  ;;  %v264_v7 = vsub.f32 %v1691_v51, %v263_v27 }
  0x23   :  { %1203 = vmatpush3.bf16.msra.mxu1 %v1602_v63  ;;  %1299 = vmatpush3.bf16.msra.mxu0 %v1602_v63 }
  0x24   :  { %1205 = vmatprep.subr.bf16.mxu1 %v1204_v21  ;;  %1301 = vmatprep.subr.bf16.mxu0 %v1300_v12 }
  0x26   :  { %977 = vmatmul.mubr.f32.vlgmr.msra.gmra.mrb[0].mxu1 %v136_v59  ;;  %1091 = vmatmul.mubr.f32.vlgmr.msra.gmra.mrb[0].mxu0 %v134_v0  ;;  %v1212_v0 = vpack.c.bf16 %v202_v31, %v195_v28  ;;  %v230_v59 = vand.u32 4294901760, %v229_v3  ;;  %v1320_v28 = vpack.c.bf16 %v242_v30, %v235_v24  ;;  %v258_v31 = vand.u32 4294901760, %v257_v22 }
  0x27   :  { %1207 = vmatpush3.bf16.msra.mxu1 %v1204_v21  ;;  %1303 = vmatpush3.bf16.msra.mxu0 %v1300_v12  ;;  %v1216_v12 = vpack.c.bf16 %v216_v15, %v209_v35  ;;  %v236_v21 = vsub.f32 %v1657_v1, %v235_v24  ;;  %v265_v35 = vand.u32 4294901760, %v264_v7  ;;  %v1240_v3 = vpack.c.bf16 %v1540_v43, %v1538_v42 }
  0x28   :  { %1209 = vmatprep.subr.bf16.mxu1 %v1208_v54  ;;  %1305 = vmatprep.subr.bf16.mxu0 %v1304_v55  ;;  %v1220_v40 = vpack.c.bf16 %v230_v59, %v223_v44 }
  0x29   :  { %979 = vmatprep.mubr.f32.mxu1 %v146_v8  ;;  %1093 = vmatprep.mubr.f32.mxu0 %v144_v14  ;;  %v1774_v14 = vand.u32 4294901760, %v1549_v46 }
  0x2a   :  { %980 = vmatmul.mubr.f32.gmra.mrb[2].mxu1 %v156_v29  ;;  %1094 = vmatmul.mubr.f32.gmra.mrb[2].mxu0 %v154_v49  ;;  %v237_v49 = vand.u32 4294901760, %v236_v21  ;;  %v1324_v29 = vpack.c.bf16 %v256_v37, %v249_v58 }
  0x2b   :  { %1211 = vmatpush3.bf16.msra.mxu1 %v1208_v54  ;;  %1307 = vmatpush3.bf16.msra.mxu0 %v1304_v55  ;;  %v1696_v32 = vsub.f32 %v1549_v46, %v1774_v14  ;;  %v244_v55 = vand.u32 4294901760, %v243_v26 }
  0x2c   :  { %1213 = vmatprep.subr.bf16.mxu1 %v1212_v0  ;;  %1309 = vmatprep.subr.bf16.mxu0 %v1308_v16 }
  0x2d   :  { %1014 = vmatprep.mubr.f32.mxu1 %v1453_v17  ;;  %1128 = vmatprep.mubr.f32.mxu0 %v1453_v17  ;;  %v270_v46 = vand.u32 4294901760, %v1696_v32  ;;  %v1224_v54 = vpack.c.bf16 %v244_v55, %v237_v49 }
  0x2f   :  { %1215 = vmatpush3.bf16.msra.mxu1 %v1212_v0  ;;  %1311 = vmatpush3.bf16.msra.mxu0 %v1308_v16  ;;  %v271_v8 = vsub.f32 %v1696_v32, %v270_v46  ;;  %v1228_v16 = vpack.c.bf16 %v258_v31, %v251_v62  ;;  %v1328_v30 = vpack.c.bf16 %v270_v46, %v263_v27 }
  0x30   :  { %1217 = vmatprep.subr.bf16.mxu1 %v1216_v12  ;;  %1313 = vmatprep.subr.bf16.mxu0 %v1312_v36  ;;  %v1236_v0 = vpack.c.bf16 %v1529_v39, %v1527_v38  ;;  %v1244_v38 = vpack.c.bf16 %v1591_v60, %v1582_v57  ;;  %v1252_v39 = vpack.c.bf16 %v1649_v48, %v1633_v19 }
  0x31   :  { %v272_v15 = vand.u32 4294901760, %v271_v8 }
  0x33   :  { %1219 = vmatpush3.bf16.msra.mxu1 %v1216_v12  ;;  %1315 = vmatpush3.bf16.msra.mxu0 %v1312_v36  ;;  %v1232_v24 = vpack.c.bf16 %v272_v15, %v265_v35 }
  0x34   :  { %1221 = vmatprep.subr.bf16.mxu1 %v1220_v40  ;;  %1317 = vmatprep.subr.bf16.mxu0 %v1316_v33 }
  0x37   :  { %1223 = vmatpush3.bf16.msra.mxu1 %v1220_v40  ;;  %1319 = vmatpush3.bf16.msra.mxu0 %v1316_v33 }
  0x38   :  { %1225 = vmatprep.subr.bf16.mxu1 %v1224_v54  ;;  %1321 = vmatprep.subr.bf16.mxu0 %v1320_v28 }
  0x3b   :  { %1227 = vmatpush3.bf16.msra.mxu1 %v1224_v54  ;;  %1323 = vmatpush3.bf16.msra.mxu0 %v1320_v28 }
  0x3c   :  { %1229 = vmatprep.subr.bf16.mxu1 %v1228_v16  ;;  %1325 = vmatprep.subr.bf16.mxu0 %v1324_v29 }
  0x3f   :  { %1231 = vmatpush3.bf16.msra.mxu1 %v1228_v16  ;;  %1327 = vmatpush3.bf16.msra.mxu0 %v1324_v29 }
  0x40   :  { %1233 = vmatprep.subr.bf16.mxu1 %v1232_v24  ;;  %1329 = vmatprep.subr.bf16.mxu0 %v1328_v30 }
  0x43   :  { %1235 = vmatpush3.bf16.msra.mxu1 %v1232_v24  ;;  %1331 = vmatpush3.bf16.msra.mxu0 %v1328_v30 }
  0x44   :  { %1237 = vmatprep.subr.bf16.mxu1 %v1236_v0  ;;  %1333 = vmatprep.subr.bf16.mxu0 %v1430_v10 }
  0x46   :  { %1015 = vmatmul.mubr.f32.vlgmr.msra.gmra.mrb[0].mxu1 %v1536_v41  ;;  %1129 = vmatmul.mubr.f32.vlgmr.msra.gmra.mrb[0].mxu0 %v1536_v41 }
  0x47   :  { %1239 = vmatpush3.bf16.msra.mxu1 %v1236_v0  ;;  %1335 = vmatpush3.bf16.msra.mxu0 %v1430_v10  ;;  %v1248_v10 = vpack.c.bf16 %v1618_v5, %v1613_v4 }
  0x48   :  { %1241 = vmatprep.subr.bf16.mxu1 %v1240_v3  ;;  %1337 = vmatprep.subr.bf16.mxu0 %v1434_v13 }
  0x49   :  { %1017 = vmatprep.mubr.f32.mxu1 %v1593_v61  ;;  %1131 = vmatprep.mubr.f32.mxu0 %v1593_v61 }
  0x4a   :  { %1018 = vmatmul.mubr.f32.gmra.mrb[2].mxu1 %v1626_v11  ;;  %1132 = vmatmul.mubr.f32.gmra.mrb[2].mxu0 %v1626_v11 }
  0x4b   :  { %1243 = vmatpush3.bf16.msra.mxu1 %v1240_v3  ;;  %1339 = vmatpush3.bf16.msra.mxu0 %v1434_v13  ;;  %v1256_v13 = vpack.c.bf16 %v1667_v53, %v1657_v1 }
  0x4c   :  { %1245 = vmatprep.subr.bf16.mxu1 %v1244_v38  ;;  %1341 = vmatprep.subr.bf16.mxu0 %v1461_v18 }
  0x4d   :  { %1052 = vmatprep.mubr.f32.mxu1 %v1476_v23  ;;  %1166 = vmatprep.mubr.f32.mxu0 %v1453_v17  ;;  %v1260_v17 = vpack.c.bf16 %v1682_v9, %v1674_v50  ;;  %v823_v23 = vld [vmem:[%s1769_s2] ss:$0 sm:$0xff] }
  0x4f   :  { %1247 = vmatpush3.bf16.msra.mxu1 %v1244_v38  ;;  %1343 = vmatpush3.bf16.msra.mxu0 %v1461_v18  ;;  %v1264_v18 = vpack.c.bf16 %v1696_v32, %v1691_v51 }
  0x50   :  { %1249 = vmatprep.subr.bf16.mxu1 %v1248_v10  ;;  %1345 = vmatprep.subr.bf16.mxu0 %v1487_v25 }
  0x53   :  { %1251 = vmatpush3.bf16.msra.mxu1 %v1248_v10  ;;  %1347 = vmatpush3.bf16.msra.mxu0 %v1487_v25 }
  0x54   :  { %1253 = vmatprep.subr.bf16.mxu1 %v1252_v39  ;;  %1349 = vmatprep.subr.bf16.mxu0 %v1514_v34 }
  0x57   :  { %1255 = vmatpush3.bf16.msra.mxu1 %v1252_v39  ;;  %1351 = vmatpush3.bf16.msra.mxu0 %v1514_v34 }
  0x58   :  { %1257 = vmatprep.subr.bf16.mxu1 %v1256_v13  ;;  %1353 = vmatprep.subr.bf16.mxu0 %v1557_v47 }
  0x5b   :  { %1259 = vmatpush3.bf16.msra.mxu1 %v1256_v13  ;;  %1355 = vmatpush3.bf16.msra.mxu0 %v1557_v47 }
  0x5c   :  { %1261 = vmatprep.subr.bf16.mxu1 %v1260_v17  ;;  %1357 = vmatprep.subr.bf16.mxu0 %v1577_v56 }
  0x5f   :  { %1263 = vmatpush3.bf16.msra.mxu1 %v1260_v17  ;;  %1359 = vmatpush3.bf16.msra.mxu0 %v1577_v56 }
  0x60   :  { %1265 = vmatprep.subr.bf16.mxu1 %v1264_v18  ;;  %1361 = vmatprep.subr.bf16.mxu0 %v1602_v63 }
  0x63   :  { %1267 = vmatpush3.bf16.msra.mxu1 %v1264_v18  ;;  %1363 = vmatpush3.bf16.msra.mxu0 %v1602_v63 }
  0x66   :  { %1053 = vmatmul.mubr.f32.vlgmr.msra.gmra.mrb[0].mxu1 %v1564_v52  ;;  %1167 = vmatmul.mubr.f32.vlgmr.msra.gmra.mrb[0].mxu0 %v1536_v41 }
  0x67   :  { %1055 = vmatprep.mubr.f32.mxu1 %v1621_v6  ;;  %1169 = vmatprep.mubr.f32.mxu0 %v1593_v61 }
  0x6a   :  { %1056 = vmatmul.mubr.f32.gmra.mrb[2].mxu1 %v1636_v20  ;;  %1170 = vmatmul.mubr.f32.gmra.mrb[2].mxu0 %v1626_v11 }
 0x139   :  { %v1054_v25 = vpop.f32.mrb[0].mxu1  ;;  %v1168_v34 = vpop.f32.mrb[0].mxu0 }
 0x13a   :  { %v1364_v42 = vadd.f32 %v1054_v25, %v823_v23  ;;  %v431_v43 = vpop.f32.mrb[1].mxu1  ;;  %v789_v47 = vpop.f32.mrb[1].mxu0 }
 0x13b   :  { %v1366_v50 = vadd.f32 %v823_v23, %v431_v43 }
 0x13c   :  { %v1365_v52 = vadd.f32 %v1364_v42, %v1168_v34 }
 0x13d   :  { %v1367_v41 = vadd.f32 %v1366_v50, %v789_v47  ;;  %v1057_v56 = vpop.f32.mrb[2].mxu1  ;;  %v1171_v57 = vpop.f32.mrb[2].mxu0 }
 0x13e   :  { %v812_v60 = vmax.f32 %v1365_v52, 0.0  ;;  %v1368_v61 = vadd.f32 %v1057_v56, %v823_v23  ;;  %v445_v63 = vpop.f32.mrb[3].mxu1  ;;  %v801_v4 = vpop.f32.mrb[3].mxu0 }
 0x13f   :  { %v811_v5 = vmax.f32 %v1367_v41, 0.0  ;;  %v1370_v6 = vadd.f32 %v823_v23, %v445_v63 }
 0x140   :  { %816 = vst [vmem:[%s1770_s3 + $0x8] sm:$0xff] %v812_v60  ;;  %v1369_v11 = vadd.f32 %v1368_v61, %v1171_v57 }
 0x141   :  { %815 = vst [vmem:[%s1770_s3] sm:$0xff] %v811_v5  ;;  %v1371_v19 = vadd.f32 %v1370_v6, %v801_v4 }
 0x142   :  { %v814_v20 = vmax.f32 %v1369_v11, 0.0 }
 0x143   :  { %v813_v48 = vmax.f32 %v1371_v19, 0.0 }
 0x144   :  { %818 = vst [vmem:[%s1770_s3 + $0x18] sm:$0xff] %v814_v20 }
 0x145   :  { %817 = vst [vmem:[%s1770_s3 + $0x10] sm:$0xff] %v813_v48 }

</bundles_post_ra>
